<compile_context>
chip_gen: v7x
topology: tpu7x:2x2x1
jax: 0.10.0
libtpu: 0.0.40
codegen_flags: <defaults>
</compile_context>

<pallas_src>
import functools

import jax
import jax.numpy as jnp
from jax.experimental import pallas as pl
from jax.experimental.pallas import tpu as pltpu


def _sep_fc_kernel(x_ref, w_ref, o_ref, *, norm, compute_dtype):
    # x_ref: [P_BLK, n, c_in], w_ref: [P_BLK, c_in, c_out], o_ref: [P_BLK, n, c_out]
    x = x_ref[...]
    w = w_ref[...]
    if compute_dtype is not None:
        x = x.astype(compute_dtype)
        w = w.astype(compute_dtype)

    # Batched matmul over the part axis -> MXU, f32 accumulation.
    acc = jax.lax.dot_general(
        x, w,
        dimension_numbers=(((2,), (1,)), ((0,), (0,))),
        preferred_element_type=jnp.float32)          # [P_BLK, n, c_out]

    if norm:
        # F.normalize(fc_bin, dim=1): per-(part, out-column) L2 norm over c_in.
        # Fold it into the output: (x @ w) * (1/max(||w_col||, eps)).
        # Norm is computed in f32 regardless of compute dtype.
        w32 = w_ref[...].astype(jnp.float32)
        sumsq = jnp.sum(w32 * w32, axis=1, keepdims=True)     # [P_BLK, 1, c_out]
        denom = jnp.maximum(jnp.sqrt(sumsq), 1e-12)           # F.normalize eps clamp
        acc = acc * (1.0 / denom)

    o_ref[...] = acc.astype(o_ref.dtype)


def _choose_p_blk(p, n, c_in, c_out, itemsize, vmem_budget_bytes=24 * 1024 * 1024):
    """Largest divisor of p whose double-buffered blocks fit the VMEM budget."""
    per_part = (n * c_in + c_in * c_out + n * c_out) * itemsize
    max_parts = max(1, vmem_budget_bytes // (2 * per_part))   # x2 for double buffering
    best = 1
    for d in range(1, p + 1):
        if p % d == 0 and d <= max_parts:
            best = d
    # If everything fits in one step but p is even, split in two so a parallel
    # grid axis exists for v7x's two TensorCores (near-neutral on v5e/v6e).
    if best == p and p > 1 and p % 2 == 0:
        best = p // 2
    return best


def separate_fcs_part_major(x_pnc, fc_bin, norm=False, compute_dtype=None):
    """Part-major core: x_pnc [p, n, c_in], fc_bin [p, c_in, c_out] -> [p, n, c_out]."""
    p, n, c_in = x_pnc.shape
    p_w, c_in_w, c_out = fc_bin.shape
    assert p == p_w and c_in == c_in_w

    itemsize = jnp.dtype(x_pnc.dtype).itemsize
    p_blk = _choose_p_blk(p, n, c_in, c_out, itemsize)
    grid = (p // p_blk,)

    return pl.pallas_call(
        functools.partial(_sep_fc_kernel, norm=norm, compute_dtype=compute_dtype),
        out_shape=jax.ShapeDtypeStruct((p, n, c_out), x_pnc.dtype),
        grid_spec=pltpu.PrefetchScalarGridSpec(
            num_scalar_prefetch=0,
            grid=grid,
            in_specs=[
                pl.BlockSpec((p_blk, n, c_in), lambda i: (i, 0, 0)),
                pl.BlockSpec((p_blk, c_in, c_out), lambda i: (i, 0, 0)),
            ],
            out_specs=pl.BlockSpec((p_blk, n, c_out), lambda i: (i, 0, 0)),
        ),
        compiler_params=pltpu.CompilerParams(
            dimension_semantics=("parallel",),
            vmem_limit_bytes=32 * 1024 * 1024,
        ),
    )(x_pnc, fc_bin)


def separate_fcs(x, fc_bin, norm=False, compute_dtype=None):
    """PyTorch layout: x [n, c_in, p], fc_bin [p, c_in, c_out] -> out [n, c_out, p].

    Prefer `separate_fcs_part_major` inside a larger model to avoid the two
    HBM transposes around every call.
    """
    x_pnc = jnp.transpose(x, (2, 0, 1))                 # [p, n, c_in]
    out_pnc = separate_fcs_part_major(x_pnc, fc_bin, norm=norm,
                                      compute_dtype=compute_dtype)
    return jnp.transpose(out_pnc, (1, 2, 0))            # [n, c_out, p]


def init_fc_bin(key, parts_num, in_channels, out_channels, dtype=jnp.float32):
    # xavier_uniform_ on a tensor of shape (p, c_in, c_out):
    #   fan_in = c_in * c_out, fan_out = p * c_out  (PyTorch convention for ndim>2)
    fan_in = in_channels * out_channels
    fan_out = parts_num * out_channels
    bound = (6.0 / (fan_in + fan_out)) ** 0.5
    return jax.random.uniform(
        key, (parts_num, in_channels, out_channels),
        minval=-bound, maxval=bound, dtype=dtype)


if __name__ == "__main__":
    # Small shapes consistent with forward(): x [n, c_in, p]
    n, c_in, c_out, p = 8, 128, 128, 8

    key = jax.random.PRNGKey(0)
    kx, kw = jax.random.split(key)
    x = jax.random.normal(kx, (n, c_in, p), dtype=jnp.float32)
    fc_bin = init_fc_bin(kw, p, c_in, c_out)

    # Pure-JAX reference of the PyTorch forward.
    def ref_fn(x, w, norm):
        xp = jnp.transpose(x, (2, 0, 1))                     # [p, n, c_in]
        if norm:
            d = jnp.maximum(jnp.sqrt(jnp.sum(w * w, axis=1, keepdims=True)), 1e-12)
            w = w / d
        out = jnp.einsum("pni,pio->pno", xp, w)
        return jnp.transpose(out, (1, 2, 0))                 # [n, c_out, p]

    # norm=False path
    out = jax.block_until_ready(
        jax.jit(functools.partial(separate_fcs, norm=False))(x, fc_bin))
    assert out.shape == (n, c_out, p), out.shape
    assert jnp.allclose(out, ref_fn(x, fc_bin, False), atol=1e-5, rtol=1e-5)

    # norm=True path (norm folded into an output scale inside the kernel)
    out_n = jax.block_until_ready(
        jax.jit(functools.partial(separate_fcs, norm=True))(x, fc_bin))
    assert jnp.allclose(out_n, ref_fn(x, fc_bin, True), atol=1e-5, rtol=1e-5)

    print("KERNEL_OK")
</pallas_src>

<mosaic_0001>
module attributes {stable_mosaic.version = 11 : i64} {
  func.func @_sep_fc_kernel(%arg0: i32, %arg1: memref<4x8x128xf32, #tpu.memory_space<vmem>>, %arg2: memref<4x128x128xf32, #tpu.memory_space<vmem>>, %arg3: memref<4x8x128xf32, #tpu.memory_space<vmem>>) attributes {dimension_semantics = [#tpu.dimension_semantics<parallel>], iteration_bounds = array<i64: 2>, scalar_prefetch = 0 : i64, scratch_operands = 0 : i64, tpu.core_type = #tpu.core_type<tc>, window_params = [{transform_indices = @transform_0, window_bounds = array<i64: 4, 8, 128>}, {transform_indices = @transform_1, window_bounds = array<i64: 4, 128, 128>}, {transform_indices = @transform_2, window_bounds = array<i64: 4, 8, 128>}]} {
    %c0 = arith.constant 0 : index
    %c0_0 = arith.constant 0 : index
    %c0_1 = arith.constant 0 : index
    %0 = vector.load %arg1[%c0, %c0_0, %c0_1] : memref<4x8x128xf32, #tpu.memory_space<vmem>>, vector<4x8x128xf32>
    %c0_2 = arith.constant 0 : index
    %c0_3 = arith.constant 0 : index
    %c0_4 = arith.constant 0 : index
    %1 = vector.load %arg2[%c0_2, %c0_3, %c0_4] : memref<4x128x128xf32, #tpu.memory_space<vmem>>, vector<4x128x128xf32>
    %cst = arith.constant dense<0.000000e+00> : vector<4x8x128xf32>
    %2 = tpu.matmul %0, %1, %cst {dimension_numbers = #tpu.dot_dimension_numbers<[2], [1], [1], [2], [0, 0, 0, 1, 1, 2], [0], [0]>} : vector<4x8x128xf32>, vector<4x128x128xf32>, vector<4x8x128xf32> -> vector<4x8x128xf32>
    %c0_5 = arith.constant 0 : index
    %c0_6 = arith.constant 0 : index
    %c0_7 = arith.constant 0 : index
    %3 = vector.load %arg3[%c0_5, %c0_6, %c0_7] : memref<4x8x128xf32, #tpu.memory_space<vmem>>, vector<4x8x128xf32>
    tpu.vector_store %arg3[%c0_5, %c0_6, %c0_7], %2 {strides = array<i32>} : memref<4x8x128xf32, #tpu.memory_space<vmem>>, vector<4x8x128xf32>,
    return
  }
  func.func @transform_0(%arg0: i32) -> (i32, i32, i32) {
    %c0_i32 = arith.constant 0 : i32
    %c0_i32_0 = arith.constant 0 : i32
    %c0_i32_1 = arith.constant 0 : i32
    return %arg0, %c0_i32, %c0_i32_0 : i32, i32, i32
  }
  func.func @transform_1(%arg0: i32) -> (i32, i32, i32) {
    %c0_i32 = arith.constant 0 : i32
    %c0_i32_0 = arith.constant 0 : i32
    %c0_i32_1 = arith.constant 0 : i32
    return %arg0, %c0_i32, %c0_i32_0 : i32, i32, i32
  }
  func.func @transform_2(%arg0: i32) -> (i32, i32, i32) {
    %c0_i32 = arith.constant 0 : i32
    %c0_i32_0 = arith.constant 0 : i32
    %c0_i32_1 = arith.constant 0 : i32
    return %arg0, %c0_i32, %c0_i32_0 : i32, i32, i32
  }
}

</mosaic_0001>

<bundles_post_ra>
// kernel: separate_fcs.1
= control target key start
LH: loop header
LB: loop body
LE: loop exit
PB: predicated region body
PF: predicated region fallthrough
CT: control target
= control target key end

     0   :  { %7 = vsyncpa [#allocation3], 0  ;;  %s1302_s0 = inlined_call_operand.vmem [shape: f32[8,8,128], index: 0, kind: input, shape index: {}]   ;;  %s1303_s1 = inlined_call_operand.hbm [shape: f32[8,128,128], index: 1, kind: input, shape index: {}]   ;;  %s1304_s2 = inlined_call_operand.vmem [shape: f32[8,8,128], index: 2, kind: output, shape index: {}]  }
   0x1   :  { %9 = vsyncpa [#allocation3 + $0x1], 0  ;;  %s1073_s9 = smov 0   ;;  %s1075_s10 = smov 0  }
   0x2   :  { %s1077_s11 = smov 0   ;;  %s1079_s12 = smov 0  }
   0x3 LB: > { %s620_s13 = sadd.s32 4294967295, %s1050_s12   ;;  %s1093_s14 = sadd.s32 1, %s1050_s12   ;;  %s1050_s12 = sphi %s1079_s12, %s1311_s12   ;;  %s1046_s11 = sphi %s1077_s11, %s1310_s11   ;;  %s1042_s10 = sphi %s1075_s10, %s1309_s10   ;;  %s1038_s9 = sphi %s1073_s9, %s1308_s9  }
   0x4   : > { %s45_s15 = ssub.s32 %s1050_s12, %s1093_s14  ;;  %s48_s16 = sadd.s32 1, %s1046_s11 }
   0x5   : > { %p46_p0 = scmp.eq.s32.totalorder %s45_s15, 0  ;;  %p55_p1 = scmp.ne.s32.totalorder %s1046_s11, %s1042_s10 }
   0x6   : > { %p56_p2 = scmp.eq.s32.totalorder %s1050_s12, 0  ;;  %p61_p3 = scmp.ne.s32.totalorder %s1042_s10, %s1038_s9 }
   0x7   : > { %s1103_s17 = scalar_select %p46_p0, %s1046_s11, %s48_s16  }
   0x8   : > { %p57_p4 = por %p56_p2, %p55_p1  ;;  %p62_p5 = scmp.eq.s32.totalorder %s620_s13, 0 }
   0x9   : > { %p948_p6 = scmp.lt.s32.totalorder %s1050_s12, 2  ;;  %s120_s19 = sand.u32 1, %s1046_s11  }
   0xa   : > { %p1108_p7 = por %p62_p5, %p61_p3  ;;  %s624_s20 = sshll.u32 %s120_s19, 9 }
   0xb   : > { %s637_s21 = sshll.u32 %s1050_s12, 13  ;;  %s124_s25 = scalar_lea.vmem [#allocation2], %s624_s20 }
   0xc   : > { %s1117_s24 = scalar_lea.hbm %s1303_s1, %s637_s21  ;;  %s132_s26 = sshll.u32 %s124_s25, 4  ;;  %s1119_s26 = int_to_ptr.vmem [resolvable:$true] %s132_s26 }
   0xd   : > { %p1121_p8 = pnand %p948_p6, %p57_p4  ;;  %s1126_s28 = scalar_lea.sflag [#allocation3], %s120_s19 }
   0xe   : > { %s986_s29 = scalar_lea.hbm %s1117_s24, 8192  ;;  %s991_s4 = scalar_lea.hbm %s1303_s1, 16384 }
   0xf   : > { %p987_p10 = scmp.ne.s32.totalorder %s1117_s24, %s986_s29  ;;  %p988_p11 = pneg %p1121_p8 }
  0x10   : > { %p992_p0 = scmp.lt.u32.totalorder %s1117_s24, %s1303_s1  ;;  %p993_p1 = scmp.lt.u32.totalorder %s991_s4, %s986_s29 }
  0x11   : > { %p989_p12 = pnand %p988_p11, %p987_p10  ;;  %p995_p3 = scmp.lt.u32.totalorder %s986_s29, %s1117_s24 }
  0x12   : > { %p994_p2 = por %p993_p1, %p992_p0 }
  0x13   : > { %p990_p13 = pneg %p989_p12 }
  0x14   : > { %p996_p4 = por %p995_p3, %p994_p2 }
  0x16   : > { %p997_p5 = pnand %p996_p4, %p990_p13 }
  0x18   : > { %1000 = shalt.err (!%p997_p5)
}
  0x19   : > { %s1001_s7 = scalar_lea.vmem %s1119_s26, 8192  ;;  %s1052_s8 = smov [#allocation2]  }
  0x1a   : > { %p1002_p6 = scmp.ne.s32.totalorder %s1119_s26, %s1001_s7  ;;  %s1006_s9 = sshll.u32 %s1052_s8, 4  ;;  %s1007_s9 = int_to_ptr.vmem [resolvable:$false] %s1006_s9 }
  0x1b   : > { %s1008_s15 = scalar_lea.vmem %s1007_s9, 16384  ;;  %p1009_p9 = scmp.lt.s32.totalorder %s1119_s26, %s1007_s9 }
  0x1c   : > { %p1004_p10 = pnand %p1002_p6, %p988_p11  ;;  %p1010_p0 = scmp.lt.s32.totalorder %s1008_s15, %s1001_s7 }
  0x1e   : > { %p1005_p12 = pneg %p1004_p10  ;;  %p1011_p1 = por %p1010_p0, %p1009_p9 }
  0x20   : > { %p1012_p2 = pnand %p1011_p1, %p1005_p12 }
  0x22   : > { %1015 = shalt.err (!%p1012_p2)
}
  0x23   : > { %s1053_s16 = smov 128   ;;  %s1054_s19 = smov 8  }
  0x24   : > { %947 = dma.hbm_to_vmem [thread:$0]  (!%p1121_p8), %s1117_s24, 8192, %s1119_s26, %s1126_s28, %s1053_s16, %s1053_s16, %s1054_s19  }
  0x25   : > { %p140_p11 = scmp.lt.s32.totalorder %s1050_s12, 3  ;;  %p1307_p13 = scmp.ge.s32.totalorder %s1050_s12, 1 }
  0x27   : > { %p141_p3 = pnand %p1307_p13, %p140_p11 }
  0x28   : > { %s146_s20 = sand.u32 (!%p141_p3), 1, %s1042_s10  }
  0x29   : > { %144 = sbr.rel (%p141_p3) target bundleno = 329 (0x149), region = 28  ;;  %s629_s21 = sshll.u32 (!%p141_p3), %s146_s20, 9 }
  0x2a   : > { %s147_s22 = scalar_lea.sflag (!%p141_p3), [#allocation3], %s146_s20  ;;  %s1158_s23 = scalar_lea.vmem (!%p141_p3), [#allocation2], %s629_s21 }
  0x30   : > { %1033 = dma.done.wait (%p1108_p7), %s147_s22, 8192  }
  0x31   : > { %1035 = vsyncadd (%p1108_p7), %s147_s22, 4294959104  ;;  %v1055_v0 = vmov 0.0|0.0   ;;  %vm1056_vm0 = vmmov 0   ;;  %v1057_v1 = vmov 0.0   ;;  %v193_v2 = vld [vmem:[%s1158_s23] sm:$0xff]  ;;  %v194_v3 = vld [vmem:[%s1158_s23 + $0x8] sm:$0xff] }
  0x32   : > { %846 = vmatprep.subr.bf16.mxu0 %v1055_v0  ;;  %870 = vmatprep.subr.bf16.mxu1 %v1055_v0  ;;  %v209_v4 = vld [vmem:[%s1158_s23 + $0x80] sm:$0xff]  ;;  %v847_v5 = vpack.c.bf16 %v194_v3, %v193_v2  ;;  %v210_v6 = vld [vmem:[%s1158_s23 + $0x88] sm:$0xff]  ;;  %v195_v7 = vld [vmem:[%s1158_s23 + $0x10] sm:$0xff]  ;;  %s630_s18 = sshll.u32 %s620_s13, 2 }
  0x33   : > { %738 = vmatprep.mubr.msk.f32.mxu0 %vm1056_vm0, %v1057_v1  ;;  %773 = vmatprep.mubr.msk.f32.mxu1 %vm1056_vm0, %v1057_v1  ;;  %v196_v8 = vld [vmem:[%s1158_s23 + $0x18] sm:$0xff]  ;;  %v871_v9 = vpack.c.bf16 %v210_v6, %v209_v4  ;;  %v211_v10 = vld [vmem:[%s1158_s23 + $0x90] sm:$0xff]  ;;  %v197_v14 = vld [vmem:[%s1158_s23 + $0x20] sm:$0xff]  ;;  %p177_p7 = scmp.lt.s32.totalorder %s630_s18, 7 }
  0x34   : > { %v212_v11 = vld [vmem:[%s1158_s23 + $0x98] sm:$0xff]  ;;  %848 = vmatpush3.bf16.msra.mxu0 %v847_v5  ;;  %v850_v12 = vpack.c.bf16 %v196_v8, %v195_v7  ;;  %v198_v15 = vld [vmem:[%s1158_s23 + $0x28] sm:$0xff]  ;;  %v213_v16 = vld [vmem:[%s1158_s23 + $0xa0] sm:$0xff] }
  0x35   : > { %872 = vmatpush3.bf16.msra.mxu1 %v871_v9  ;;  %849 = vmatprep.subr.bf16.mxu0 %v1055_v0  ;;  %v874_v13 = vpack.c.bf16 %v212_v11, %v211_v10  ;;  %v214_v17 = vld [vmem:[%s1158_s23 + $0xa8] sm:$0xff]  ;;  %v853_v18 = vpack.c.bf16 %v198_v15, %v197_v14  ;;  %v199_v20 = vld [vmem:[%s1158_s23 + $0x30] sm:$0xff]  ;;  %v200_v21 = vld [vmem:[%s1158_s23 + $0x38] sm:$0xff]  ;;  %s1313_s18 = smov (!%p177_p7, %s630_s18), 7 }
  0x36   : > { %873 = vmatprep.subr.bf16.mxu1 %v1055_v0  ;;  %v877_v19 = vpack.c.bf16 %v214_v17, %v213_v16  ;;  %v215_v22 = vld [vmem:[%s1158_s23 + $0xb0] sm:$0xff]  ;;  %v216_v23 = vld [vmem:[%s1158_s23 + $0xb8] sm:$0xff]  ;;  %v856_v24 = vpack.c.bf16 %v200_v21, %v199_v20  ;;  %v201_v26 = vld [vmem:[%s1158_s23 + $0x40] sm:$0xff]  ;;  %s631_s12 = sshll.u32 %s1313_s18, 3 }
  0x37   : > { %v880_v25 = vpack.c.bf16 %v216_v23, %v215_v22  ;;  %v202_v27 = vld [vmem:[%s1158_s23 + $0x48] sm:$0xff]  ;;  %v217_v28 = vld [vmem:[%s1158_s23 + $0xc0] sm:$0xff]  ;;  %v203_v32 = vld [vmem:[%s1158_s23 + $0x50] sm:$0xff]  ;;  %s1225_s25 = scalar_lea.vmem %s1302_s0, %s631_s12  ;;  %s187_s28 = scalar_lea.vmem %s1304_s2, %s631_s12 }
  0x38   : > { %851 = vmatpush3.bf16.msra.mxu0 %v850_v12  ;;  %v218_v29 = vld [vmem:[%s1158_s23 + $0xc8] sm:$0xff]  ;;  %v859_v30 = vpack.c.bf16 %v202_v27, %v201_v26  ;;  %v204_v33 = vld [vmem:[%s1158_s23 + $0x58] sm:$0xff]  ;;  %v219_v34 = vld [vmem:[%s1158_s23 + $0xd0] sm:$0xff] }
  0x39   : > { %875 = vmatpush3.bf16.msra.mxu1 %v874_v13  ;;  %852 = vmatprep.subr.bf16.mxu0 %v1055_v0  ;;  %v883_v31 = vpack.c.bf16 %v218_v29, %v217_v28  ;;  %v220_v35 = vld [vmem:[%s1158_s23 + $0xd8] sm:$0xff]  ;;  %v862_v36 = vpack.c.bf16 %v204_v33, %v203_v32  ;;  %v205_v38 = vld [vmem:[%s1158_s23 + $0x60] sm:$0xff]  ;;  %v206_v39 = vld [vmem:[%s1158_s23 + $0x68] sm:$0xff] }
  0x3a   : > { %876 = vmatprep.subr.bf16.mxu1 %v1055_v0  ;;  %v886_v37 = vpack.c.bf16 %v220_v35, %v219_v34  ;;  %v221_v40 = vld [vmem:[%s1158_s23 + $0xe0] sm:$0xff]  ;;  %v222_v41 = vld [vmem:[%s1158_s23 + $0xe8] sm:$0xff]  ;;  %v865_v42 = vpack.c.bf16 %v206_v39, %v205_v38  ;;  %v207_v44 = vld [vmem:[%s1158_s23 + $0x70] sm:$0xff] }
  0x3b   : > { %v889_v43 = vpack.c.bf16 %v222_v41, %v221_v40  ;;  %v208_v45 = vld [vmem:[%s1158_s23 + $0x78] sm:$0xff]  ;;  %v223_v46 = vld [vmem:[%s1158_s23 + $0xf0] sm:$0xff]  ;;  %v225_v50 = vld [vmem:[%s1158_s23 + $0x100] sm:$0xff] }
  0x3c   : > { %854 = vmatpush3.bf16.msra.mxu0 %v853_v18  ;;  %v224_v47 = vld [vmem:[%s1158_s23 + $0xf8] sm:$0xff]  ;;  %v868_v48 = vpack.c.bf16 %v208_v45, %v207_v44  ;;  %v226_v51 = vld [vmem:[%s1158_s23 + $0x108] sm:$0xff]  ;;  %v241_v52 = vld [vmem:[%s1158_s23 + $0x180] sm:$0xff] }
  0x3d   : > { %878 = vmatpush3.bf16.msra.mxu1 %v877_v19  ;;  %855 = vmatprep.subr.bf16.mxu0 %v1055_v0  ;;  %v892_v49 = vpack.c.bf16 %v224_v47, %v223_v46  ;;  %v242_v53 = vld [vmem:[%s1158_s23 + $0x188] sm:$0xff]  ;;  %v189_v54 = vld [vmem:[%s1225_s25] sm:$0xff]  ;;  %v895_v55 = vpack.c.bf16 %v226_v51, %v225_v50  ;;  %v227_v58 = vld [vmem:[%s1158_s23 + $0x110] sm:$0xff] }
  0x3e   : > { %879 = vmatprep.subr.bf16.mxu1 %v1055_v0  ;;  %v190_v56 = vld [vmem:[%s1225_s25 + $0x8] sm:$0xff]  ;;  %v919_v57 = vpack.c.bf16 %v242_v53, %v241_v52  ;;  %v228_v59 = vld [vmem:[%s1158_s23 + $0x118] sm:$0xff]  ;;  %v243_v60 = vld [vmem:[%s1158_s23 + $0x190] sm:$0xff] }
  0x3f   : > { %v244_v61 = vld [vmem:[%s1158_s23 + $0x198] sm:$0xff]  ;;  %v898_v62 = vpack.c.bf16 %v228_v59, %v227_v58  ;;  %v229_v2 = vld [vmem:[%s1158_s23 + $0x120] sm:$0xff]  ;;  %v230_v3 = vld [vmem:[%s1158_s23 + $0x128] sm:$0xff] }
  0x40   : > { %857 = vmatpush3.bf16.msra.mxu0 %v856_v24  ;;  %v922_v63 = vpack.c.bf16 %v244_v61, %v243_v60  ;;  %v245_v4 = vld [vmem:[%s1158_s23 + $0x1a0] sm:$0xff]  ;;  %v246_v5 = vld [vmem:[%s1158_s23 + $0x1a8] sm:$0xff]  ;;  %v901_v6 = vpack.c.bf16 %v230_v3, %v229_v2  ;;  %v231_v8 = vld [vmem:[%s1158_s23 + $0x130] sm:$0xff] }
  0x41   : > { %881 = vmatpush3.bf16.msra.mxu1 %v880_v25  ;;  %858 = vmatprep.subr.bf16.mxu0 %v1055_v0  ;;  %v925_v7 = vpack.c.bf16 %v246_v5, %v245_v4  ;;  %v232_v9 = vld [vmem:[%s1158_s23 + $0x138] sm:$0xff]  ;;  %v247_v10 = vld [vmem:[%s1158_s23 + $0x1b0] sm:$0xff]  ;;  %v233_v13 = vld [vmem:[%s1158_s23 + $0x140] sm:$0xff] }
  0x42   : > { %882 = vmatprep.subr.bf16.mxu1 %v1055_v0  ;;  %v248_v11 = vld [vmem:[%s1158_s23 + $0x1b8] sm:$0xff]  ;;  %v234_v14 = vld [vmem:[%s1158_s23 + $0x148] sm:$0xff]  ;;  %v249_v15 = vld [vmem:[%s1158_s23 + $0x1c0] sm:$0xff] }
  0x43   : > { %v928_v12 = vpack.c.bf16 %v248_v11, %v247_v10  ;;  %v250_v16 = vld [vmem:[%s1158_s23 + $0x1c8] sm:$0xff]  ;;  %v907_v17 = vpack.c.bf16 %v234_v14, %v233_v13  ;;  %v235_v19 = vld [vmem:[%s1158_s23 + $0x150] sm:$0xff]  ;;  %v236_v20 = vld [vmem:[%s1158_s23 + $0x158] sm:$0xff] }
  0x44   : > { %860 = vmatpush3.bf16.msra.mxu0 %v859_v30  ;;  %v931_v18 = vpack.c.bf16 %v250_v16, %v249_v15  ;;  %v251_v21 = vld [vmem:[%s1158_s23 + $0x1d0] sm:$0xff]  ;;  %v252_v22 = vld [vmem:[%s1158_s23 + $0x1d8] sm:$0xff]  ;;  %v910_v23 = vpack.c.bf16 %v236_v20, %v235_v19  ;;  %v237_v25 = vld [vmem:[%s1158_s23 + $0x160] sm:$0xff] }
  0x45   : > { %884 = vmatpush3.bf16.msra.mxu1 %v883_v31  ;;  %861 = vmatprep.subr.bf16.mxu0 %v1055_v0  ;;  %v934_v24 = vpack.c.bf16 %v252_v22, %v251_v21  ;;  %v238_v26 = vld [vmem:[%s1158_s23 + $0x168] sm:$0xff]  ;;  %v253_v27 = vld [vmem:[%s1158_s23 + $0x1e0] sm:$0xff]  ;;  %v239_v31 = vld [vmem:[%s1158_s23 + $0x170] sm:$0xff] }
  0x46   : > { %885 = vmatprep.subr.bf16.mxu1 %v1055_v0  ;;  %v254_v28 = vld [vmem:[%s1158_s23 + $0x1e8] sm:$0xff]  ;;  %v913_v29 = vpack.c.bf16 %v238_v26, %v237_v25  ;;  %v240_v32 = vld [vmem:[%s1158_s23 + $0x178] sm:$0xff]  ;;  %v255_v33 = vld [vmem:[%s1158_s23 + $0x1f0] sm:$0xff] }
  0x47   : > { %v937_v30 = vpack.c.bf16 %v254_v28, %v253_v27  ;;  %v256_v34 = vld [vmem:[%s1158_s23 + $0x1f8] sm:$0xff]  ;;  %v916_v35 = vpack.c.bf16 %v240_v32, %v239_v31 }
  0x48   : > { %863 = vmatpush3.bf16.msra.mxu0 %v862_v36  ;;  %v940_v36 = vpack.c.bf16 %v256_v34, %v255_v33  ;;  %v192_v38 = vld [vmem:[%s1225_s25 + $0x18] sm:$0xff] }
  0x49   : > { %887 = vmatpush3.bf16.msra.mxu1 %v886_v37  ;;  %864 = vmatprep.subr.bf16.mxu0 %v1055_v0  ;;  %v191_v37 = vld [vmem:[%s1225_s25 + $0x10] sm:$0xff] }
  0x4a   : > { %888 = vmatprep.subr.bf16.mxu1 %v1055_v0 }
  0x4c   : > { %866 = vmatpush3.bf16.msra.mxu0 %v865_v42 }
  0x4d   : > { %890 = vmatpush3.bf16.msra.mxu1 %v889_v43  ;;  %867 = vmatprep.subr.bf16.mxu0 %v1055_v0 }
  0x4e   : > { %891 = vmatprep.subr.bf16.mxu1 %v1055_v0 }
  0x50   : > { %869 = vmatpush3.bf16.msra.mxu0 %v868_v48 }
  0x51   : > { %893 = vmatpush3.bf16.msra.mxu1 %v892_v49  ;;  %894 = vmatprep.subr.bf16.mxu0 %v1055_v0 }
  0x52   : > { %918 = vmatprep.subr.bf16.mxu1 %v1055_v0 }
  0x53   : > { %739 = vmatmul.mubr.f32.vlgmr.msra.gmra.mrb[0].mxu0 %v189_v54 }
  0x54   : > { %774 = vmatmul.mubr.f32.vlgmr.msra.gmra.mrb[0].mxu1 %v190_v56  ;;  %896 = vmatpush3.bf16.msra.mxu0 %v895_v55 }
  0x55   : > { %920 = vmatpush3.bf16.msra.mxu1 %v919_v57  ;;  %897 = vmatprep.subr.bf16.mxu0 %v1055_v0 }
  0x56   : > { %921 = vmatprep.subr.bf16.mxu1 %v1055_v0  ;;  %808 = vmatprep.mubr.msk.f32.mxu0 %vm1056_vm0, %v1057_v1 }
  0x57   : > { %843 = vmatprep.mubr.msk.f32.mxu1 %vm1056_vm0, %v1057_v1  ;;  %v904_v1 = vpack.c.bf16 %v232_v9, %v231_v8 }
  0x58   : > { %899 = vmatpush3.bf16.msra.mxu0 %v898_v62 }
  0x59   : > { %923 = vmatpush3.bf16.msra.mxu1 %v922_v63  ;;  %900 = vmatprep.subr.bf16.mxu0 %v1055_v0 }
  0x5a   : > { %924 = vmatprep.subr.bf16.mxu1 %v1055_v0 }
  0x5c   : > { %902 = vmatpush3.bf16.msra.mxu0 %v901_v6 }
  0x5d   : > { %926 = vmatpush3.bf16.msra.mxu1 %v925_v7  ;;  %903 = vmatprep.subr.bf16.mxu0 %v1055_v0 }
  0x5e   : > { %927 = vmatprep.subr.bf16.mxu1 %v1055_v0 }
  0x60   : > { %905 = vmatpush3.bf16.msra.mxu0 %v904_v1 }
  0x61   : > { %929 = vmatpush3.bf16.msra.mxu1 %v928_v12  ;;  %906 = vmatprep.subr.bf16.mxu0 %v1055_v0 }
  0x62   : > { %930 = vmatprep.subr.bf16.mxu1 %v1055_v0 }
  0x64   : > { %908 = vmatpush3.bf16.msra.mxu0 %v907_v17 }
  0x65   : > { %932 = vmatpush3.bf16.msra.mxu1 %v931_v18  ;;  %909 = vmatprep.subr.bf16.mxu0 %v1055_v0 }
  0x66   : > { %933 = vmatprep.subr.bf16.mxu1 %v1055_v0 }
  0x68   : > { %911 = vmatpush3.bf16.msra.mxu0 %v910_v23 }
  0x69   : > { %935 = vmatpush3.bf16.msra.mxu1 %v934_v24  ;;  %912 = vmatprep.subr.bf16.mxu0 %v1055_v0 }
  0x6a   : > { %936 = vmatprep.subr.bf16.mxu1 %v1055_v0 }
  0x6c   : > { %914 = vmatpush3.bf16.msra.mxu0 %v913_v29 }
  0x6d   : > { %938 = vmatpush3.bf16.msra.mxu1 %v937_v30  ;;  %915 = vmatprep.subr.bf16.mxu0 %v1055_v0 }
  0x6e   : > { %939 = vmatprep.subr.bf16.mxu1 %v1055_v0 }
  0x70   : > { %917 = vmatpush3.bf16.msra.mxu0 %v916_v35 }
  0x71   : > { %941 = vmatpush3.bf16.msra.mxu1 %v940_v36 }
  0x73   : > { %809 = vmatmul.mubr.f32.vlgmr.msra.gmra.mrb[2].mxu0 %v191_v37 }
  0x74   : > { %844 = vmatmul.mubr.f32.vlgmr.msra.gmra.mrb[2].mxu1 %v192_v38 }
 0x126   : > { %v323_v39 = vpop.f32.mrb[0].mxu0 }
 0x127   : > { %537 = vst [vmem:[%s187_s28] sm:$0xff] %v323_v39  ;;  %v740_v40 = vpop.f32.mrb[1].mxu0  ;;  %v393_v41 = vpop.f32.mrb[0].mxu1 }
 0x128   : > { %538 = vst [vmem:[%s187_s28 + $0x8] sm:$0xff] %v393_v41  ;;  %v775_v42 = vpop.f32.mrb[1].mxu1 }
 0x146   : > { %v463_v43 = vpop.f32.mrb[2].mxu0 }
 0x147   : > { %539 = vst [vmem:[%s187_s28 + $0x10] sm:$0xff] %v463_v43  ;;  %v533_v0 = vpop.f32.mrb[2].mxu1  ;;  %v810_v44 = vpop.f32.mrb[3].mxu0 }
 0x148   : > { %540 = vst [vmem:[%s187_s28 + $0x18] sm:$0xff] %v533_v0  ;;  %v845_v45 = vpop.f32.mrb[3].mxu1 }
 0x149 PF: > { %p12_p8 = scmp.ge.s32.totalorder %s1093_s14, 4   ;;  %s1308_s9 = smov %s1042_s10 }
 0x14a   : > { %s1309_s10 = smov %s1046_s11  ;;  %s1310_s11 = smov %s1103_s17 }
 0x14b   : > { %s1311_s12 = smov %s1093_s14  ;;  %14 = sbr.rel (!%p12_p8) target bundleno = 3 (0x3), region = 71 }
 0x152   :  { %563 = vsyncpa [#allocation3], 1 }
 0x153   :  { %565 = vsyncpa [#allocation3 + $0x1], 1 }

</bundles_post_ra>
